<compile_context>
chip_gen: v7x
topology: tpu7x:2x2x1
jax: 0.10.0
libtpu: 0.0.40
codegen_flags: <defaults>
</compile_context>

<pallas_src>
import functools
import math

import jax
import jax.numpy as jnp
from jax import lax
from jax.experimental import pallas as pl
from jax.experimental.pallas import tpu as pltpu


# ---------------------------------------------------------------------------
# helpers
# ---------------------------------------------------------------------------
def _round_up(x, m):
    return (x + m - 1) // m * m


def _choose_tm(m, preferred=1024, min_steps=1):
    """Row-tile: cap at `preferred`, >= `min_steps` grid steps, multiple of 16."""
    steps = max(min_steps, pl.cdiv(m, preferred))
    return max(16, _round_up(pl.cdiv(m, steps), 16))


def _fold_bn(w, b, gamma, beta, mean, var, eps=1e-5):
    """Fold eval-mode BatchNorm into a conv weight/bias (PyTorch OIHW layout)."""
    s = gamma / jnp.sqrt(var + eps)                      # (O,)
    w_f = w * s[:, None, None, None]
    b_f = (b - mean) * s + beta
    return w_f, b_f


def _conv_w_to_mat(w):
    """(O, I, kh, kw) -> (kh*kw*I, O) matmul weight; K order = (kh, kw, I)."""
    o, i, kh, kw = w.shape
    return w.transpose(2, 3, 1, 0).reshape(kh * kw * i, o)


def _bias_row(b):
    return b.astype(jnp.float32).reshape(1, -1)


def _im2col_3x3_s2_p1(x_nhwc):
    """3x3 / stride-2 / pad-1 patch extraction in NHWC (no zero padding of K).

    Returns (B*Ho*Wo, 9*C), Ho, Wo.  K order is (kh, kw, c), matching
    _conv_w_to_mat.
    """
    B, H, W, C = x_nhwc.shape
    Ho, Wo = (H + 1) // 2, (W + 1) // 2
    xp = jnp.pad(x_nhwc, ((0, 0), (1, 1), (1, 1), (0, 0)))
    taps = []
    for kh in range(3):
        for kw in range(3):
            taps.append(
                lax.slice(
                    xp,
                    (0, kh, kw, 0),
                    (B, kh + 2 * Ho - 1, kw + 2 * Wo - 1, C),
                    (1, 2, 2, 1),
                )
            )
    patches = jnp.concatenate(taps, axis=-1)
    return patches.reshape(B * Ho * Wo, 9 * C), Ho, Wo


# ---------------------------------------------------------------------------
# Pallas kernel: chained  Y = (... relu6?(X @ W_s + b_s) ...)  on the MXU
#   refs = (x_ref, w_0, b_0, [w_1, b_1, ...], o_ref)
#   f32 accumulation per stage; inter-stage activations stay in VMEM/vregs.
# ---------------------------------------------------------------------------
def _chain_mm_kernel(*refs, relu6_flags, compute_dtype):
    x_ref, o_ref = refs[0], refs[-1]
    wb_refs = refs[1:-1]
    acc = x_ref[...]
    for s, relu in enumerate(relu6_flags):
        w = wb_refs[2 * s][...]
        b = wb_refs[2 * s + 1][...]                      # (1, N_s) f32
        acc = jnp.dot(acc.astype(compute_dtype), w,
                      preferred_element_type=jnp.float32) + b
        if relu:
            acc = jnp.clip(acc, 0.0, 6.0)
    o_ref[...] = acc.astype(o_ref.dtype)


def _conv_mm_chain(x_mat, stages, *, out_dtype, tm_pref=1024):
    """x_mat (M, K) pushed through chained (W_s, b_s, relu6_s), tiled over M.

    stages: list of (w_mat (K_s, N_s) bf16, bias (1, N_s) f32, relu6 bool),
    with K_0 == K and K_{s+1} == N_s.  Only the final stage's output touches
    HBM.
    """
    M, K = x_mat.shape

    tm = _choose_tm(M, tm_pref)
    M_pad = _round_up(M, tm)
    if M_pad != M:
        # Padded rows compute relu6(b)-style garbage and are sliced off below;
        # they must never be consumed by a later fusion.
        x_mat = jnp.pad(x_mat, ((0, M_pad - M), (0, 0)))

    n_out = stages[-1][0].shape[1]
    out_itemsize = jnp.dtype(out_dtype).itemsize

    flops = 0
    w_bytes = 0
    k_prev = K
    for w, b, _ in stages:
        kw_, nw_ = w.shape
        assert kw_ == k_prev and b.shape == (1, nw_)
        flops += 2 * M_pad * kw_ * nw_
        w_bytes += kw_ * nw_ * w.dtype.itemsize + nw_ * 4
        k_prev = nw_

    cost = pl.CostEstimate(
        flops=flops,
        transcendentals=0,
        bytes_accessed=(M_pad * K * x_mat.dtype.itemsize
                        + w_bytes
                        + M_pad * n_out * out_itemsize),
    )

    in_specs = [pl.BlockSpec((tm, K), lambda i: (i, 0))]
    operands = [x_mat]
    for w, b, _ in stages:
        in_specs.append(pl.BlockSpec(w.shape, lambda i: (0, 0)))   # grid-constant
        in_specs.append(pl.BlockSpec(b.shape, lambda i: (0, 0)))
        operands.extend([w, b])

    out = pl.pallas_call(
        functools.partial(
            _chain_mm_kernel,
            relu6_flags=tuple(r for _, _, r in stages),
            compute_dtype=jnp.bfloat16,
        ),
        out_shape=jax.ShapeDtypeStruct((M_pad, n_out), out_dtype),
        grid_spec=pltpu.PrefetchScalarGridSpec(
            num_scalar_prefetch=0,
            grid=(M_pad // tm,),
            in_specs=in_specs,
            out_specs=pl.BlockSpec((tm, n_out), lambda i: (i, 0)),
        ),
        compiler_params=pltpu.CompilerParams(
            # M axis is independent; on v7x multiple steps shard across the
            # two TensorCores, on v5e/v6e it is just a serial loop.
            dimension_semantics=("parallel",),
        ),
        cost_estimate=cost,
    )(*operands)

    return out[:M] if M_pad != M else out


# ---------------------------------------------------------------------------
# PatchEmbedding forward
# ---------------------------------------------------------------------------
def patch_embedding(x_nchw, params):
    """x_nchw: (B, 3, H, W) f32 -> (B, out_channels, H//4, W//4) f32."""
    B, c_in, H, W = x_nchw.shape
    compute_dtype = jnp.bfloat16

    c1 = params["w1"].shape[0]
    c3 = params["w3"].shape[0]

    # Fold BN into conv1/conv2; build unpadded bf16 weight mats + f32 biases.
    w1f, b1f = _fold_bn(params["w1"], params["b1"], params["bn1_gamma"],
                        params["bn1_beta"], params["bn1_mean"], params["bn1_var"])
    w2f, b2f = _fold_bn(params["w2"], params["b2"], params["bn2_gamma"],
                        params["bn2_beta"], params["bn2_mean"], params["bn2_var"])
    w1m = _conv_w_to_mat(w1f).astype(compute_dtype)          # (27,  c1)
    w2m = _conv_w_to_mat(w2f).astype(compute_dtype)          # (9*c1, c3)
    w3m = _conv_w_to_mat(params["w3"]).astype(compute_dtype)  # (c3,  c3)
    b1v = _bias_row(b1f)
    b2v = _bias_row(b2f)
    b3v = _bias_row(params["b3"])

    # single NCHW -> NHWC transpose at the boundary; everything below is NHWC
    x = x_nchw.transpose(0, 2, 3, 1).astype(compute_dtype)

    # stage 1: conv1 + bn1 + relu6  (output kept at N = c1, no lane padding)
    xm, ho1, wo1 = _im2col_3x3_s2_p1(x)
    y1 = _conv_mm_chain(xm, [(w1m, b1v, True)], out_dtype=compute_dtype)
    y1 = y1.reshape(B, ho1, wo1, c1)

    # stage 2 + 3 fused: relu6(bn2(conv2)) and the 1x1 conv3 in one kernel;
    # y2 never touches HBM.
    xm, ho2, wo2 = _im2col_3x3_s2_p1(y1)
    y3 = _conv_mm_chain(
        xm,
        [(w2m, b2v, True), (w3m, b3v, False)],
        out_dtype=jnp.float32,
    )

    y3 = y3.reshape(B, ho2, wo2, c3)
    return y3.transpose(0, 3, 1, 2)  # back to NCHW


# ---------------------------------------------------------------------------
# pure-JAX f32 reference (same semantics as the PyTorch module in eval mode)
# ---------------------------------------------------------------------------
def _reference(x, p):
    def conv(z, w, b, stride, pad):
        out = lax.conv_general_dilated(
            z, w, (stride, stride), ((pad, pad), (pad, pad)),
            dimension_numbers=("NCHW", "OIHW", "NCHW"))
        return out + b[None, :, None, None]

    def bn(z, g, b, m, v, eps=1e-5):
        inv = g / jnp.sqrt(v + eps)
        return (z - m[None, :, None, None]) * inv[None, :, None, None] + b[None, :, None, None]

    z = conv(x, p["w1"], p["b1"], 2, 1)
    z = jnp.clip(bn(z, p["bn1_gamma"], p["bn1_beta"], p["bn1_mean"], p["bn1_var"]), 0.0, 6.0)
    z = conv(z, p["w2"], p["b2"], 2, 1)
    z = jnp.clip(bn(z, p["bn2_gamma"], p["bn2_beta"], p["bn2_mean"], p["bn2_var"]), 0.0, 6.0)
    z = conv(z, p["w3"], p["b3"], 1, 0)
    return z


if __name__ == "__main__":
    key = jax.random.PRNGKey(0)
    keys = jax.random.split(key, 16)

    B, H, W = 2, 16, 16
    inter_channel, out_channels = 32, 48

    def conv_init(kw_, kb_, o, i, k):
        fan_in = i * k * k
        bound = 1.0 / math.sqrt(fan_in)
        w = jax.random.uniform(kw_, (o, i, k, k), jnp.float32, -bound, bound)
        b = jax.random.uniform(kb_, (o,), jnp.float32, -bound, bound)
        return w, b

    w1, b1 = conv_init(keys[0], keys[1], inter_channel, 3, 3)
    w2, b2 = conv_init(keys[2], keys[3], out_channels, inter_channel, 3)
    w3, b3 = conv_init(keys[4], keys[5], out_channels, out_channels, 1)

    params = dict(
        w1=w1, b1=b1,
        bn1_gamma=jax.random.uniform(keys[6], (inter_channel,), jnp.float32, 0.5, 1.5),
        bn1_beta=0.2 * jax.random.normal(keys[7], (inter_channel,), jnp.float32),
        bn1_mean=0.2 * jax.random.normal(keys[8], (inter_channel,), jnp.float32),
        bn1_var=jax.random.uniform(keys[9], (inter_channel,), jnp.float32, 0.5, 1.5),
        w2=w2, b2=b2,
        bn2_gamma=jax.random.uniform(keys[10], (out_channels,), jnp.float32, 0.5, 1.5),
        bn2_beta=0.2 * jax.random.normal(keys[11], (out_channels,), jnp.float32),
        bn2_mean=0.2 * jax.random.normal(keys[12], (out_channels,), jnp.float32),
        bn2_var=jax.random.uniform(keys[13], (out_channels,), jnp.float32, 0.5, 1.5),
        w3=w3, b3=b3,
    )

    x = jax.random.normal(keys[14], (B, 3, H, W), jnp.float32)

    y = jax.block_until_ready(jax.jit(patch_embedding)(x, params))
    y_ref = _reference(x, params)

    assert y.shape == (B, out_channels, H // 4, W // 4), y.shape
    # bf16 MXU path vs f32 reference -> loosened tolerance
    assert jnp.allclose(y, y_ref, atol=5e-2, rtol=5e-2), float(jnp.max(jnp.abs(y - y_ref)))

    print("KERNEL_OK")
</pallas_src>

<mosaic_0001>
module attributes {stable_mosaic.version = 11 : i64} {
  func.func @_chain_mm_kernel(%arg0: i32, %arg1: memref<128x27xbf16, #tpu.memory_space<vmem>>, %arg2: memref<27x32xbf16, #tpu.memory_space<vmem>>, %arg3: memref<1x32xf32, #tpu.memory_space<vmem>>, %arg4: memref<128x32xbf16, #tpu.memory_space<vmem>>) attributes {dimension_semantics = [#tpu.dimension_semantics<parallel>], iteration_bounds = array<i64: 1>, scalar_prefetch = 0 : i64, scratch_operands = 0 : i64, tpu.core_type = #tpu.core_type<tc>, window_params = [{transform_indices = @transform_0, window_bounds = array<i64: 128, 27>}, {pipeline_mode = #tpu.pipeline_mode<synchronous>, transform_indices = @transform_1, window_bounds = array<i64: 27, 32>}, {pipeline_mode = #tpu.pipeline_mode<synchronous>, transform_indices = @transform_2, window_bounds = array<i64: 1, 32>}, {transform_indices = @transform_3, window_bounds = array<i64: 128, 32>}]} {
    %c0 = arith.constant 0 : index
    %c0_0 = arith.constant 0 : index
    %0 = vector.load %arg1[%c0, %c0_0] : memref<128x27xbf16, #tpu.memory_space<vmem>>, vector<128x27xbf16>
    %c0_1 = arith.constant 0 : index
    %c0_2 = arith.constant 0 : index
    %1 = vector.load %arg2[%c0_1, %c0_2] : memref<27x32xbf16, #tpu.memory_space<vmem>>, vector<27x32xbf16>
    %c0_3 = arith.constant 0 : index
    %c0_4 = arith.constant 0 : index
    %2 = vector.load %arg3[%c0_3, %c0_4] : memref<1x32xf32, #tpu.memory_space<vmem>>, vector<1x32xf32>
    %cst = arith.constant dense<0.000000e+00> : vector<128x32xf32>
    %3 = tpu.matmul %0, %1, %cst {dimension_numbers = #tpu.dot_dimension_numbers<[1], [0], [0], [1], [0, 0, 1, 1], [], []>} : vector<128x27xbf16>, vector<27x32xbf16>, vector<128x32xf32> -> vector<128x32xf32>
    %4 = vector.broadcast %2 : vector<1x32xf32> to vector<128x32xf32>
    %5 = arith.addf %3, %4 : vector<128x32xf32>
    %cst_5 = arith.constant 0.000000e+00 : f32
    %cst_6 = arith.constant 6.000000e+00 : f32
    %6 = vector.broadcast %cst_5 : f32 to vector<128x32xf32>
    %7 = arith.maximumf %6, %5 : vector<128x32xf32>
    %8 = vector.broadcast %cst_6 : f32 to vector<128x32xf32>
    %9 = arith.minimumf %8, %7 : vector<128x32xf32>
    %10 = arith.truncf %9 : vector<128x32xf32> to vector<128x32xbf16>
    %c0_7 = arith.constant 0 : index
    %c0_8 = arith.constant 0 : index
    %11 = vector.load %arg4[%c0_7, %c0_8] : memref<128x32xbf16, #tpu.memory_space<vmem>>, vector<128x32xbf16>
    tpu.vector_store %arg4[%c0_7, %c0_8], %10 {strides = array<i32>} : memref<128x32xbf16, #tpu.memory_space<vmem>>, vector<128x32xbf16>,
    return
  }
  func.func @transform_0(%arg0: i32) -> (i32, i32) {
    %c0_i32 = arith.constant 0 : i32
    %c0_i32_0 = arith.constant 0 : i32
    return %arg0, %c0_i32 : i32, i32
  }
  func.func @transform_1(%arg0: i32) -> (i32, i32) {
    %c0_i32 = arith.constant 0 : i32
    %c0_i32_0 = arith.constant 0 : i32
    %c0_i32_1 = arith.constant 0 : i32
    return %c0_i32, %c0_i32_0 : i32, i32
  }
  func.func @transform_2(%arg0: i32) -> (i32, i32) {
    %c0_i32 = arith.constant 0 : i32
    %c0_i32_0 = arith.constant 0 : i32
    %c0_i32_1 = arith.constant 0 : i32
    return %c0_i32, %c0_i32_0 : i32, i32
  }
  func.func @transform_3(%arg0: i32) -> (i32, i32) {
    %c0_i32 = arith.constant 0 : i32
    %c0_i32_0 = arith.constant 0 : i32
    return %arg0, %c0_i32 : i32, i32
  }
}

module attributes {stable_mosaic.version = 11 : i64} {
  func.func @_chain_mm_kernel(%arg0: i32, %arg1: memref<32x288xbf16, #tpu.memory_space<vmem>>, %arg2: memref<288x48xbf16, #tpu.memory_space<vmem>>, %arg3: memref<1x48xf32, #tpu.memory_space<vmem>>, %arg4: memref<48x48xbf16, #tpu.memory_space<vmem>>, %arg5: memref<1x48xf32, #tpu.memory_space<vmem>>, %arg6: memref<32x48xf32, #tpu.memory_space<vmem>>) attributes {dimension_semantics = [#tpu.dimension_semantics<parallel>], iteration_bounds = array<i64: 1>, scalar_prefetch = 0 : i64, scratch_operands = 0 : i64, tpu.core_type = #tpu.core_type<tc>, window_params = [{transform_indices = @transform_0, window_bounds = array<i64: 32, 288>}, {pipeline_mode = #tpu.pipeline_mode<synchronous>, transform_indices = @transform_1, window_bounds = array<i64: 288, 48>}, {pipeline_mode = #tpu.pipeline_mode<synchronous>, transform_indices = @transform_2, window_bounds = array<i64: 1, 48>}, {pipeline_mode = #tpu.pipeline_mode<synchronous>, transform_indices = @transform_3, window_bounds = array<i64: 48, 48>}, {pipeline_mode = #tpu.pipeline_mode<synchronous>, transform_indices = @transform_4, window_bounds = array<i64: 1, 48>}, {transform_indices = @transform_5, window_bounds = array<i64: 32, 48>}]} {
    %c0 = arith.constant 0 : index
    %c0_0 = arith.constant 0 : index
    %0 = vector.load %arg1[%c0, %c0_0] : memref<32x288xbf16, #tpu.memory_space<vmem>>, vector<32x288xbf16>
    %c0_1 = arith.constant 0 : index
    %c0_2 = arith.constant 0 : index
    %1 = vector.load %arg2[%c0_1, %c0_2] : memref<288x48xbf16, #tpu.memory_space<vmem>>, vector<288x48xbf16>
    %c0_3 = arith.constant 0 : index
    %c0_4 = arith.constant 0 : index
    %2 = vector.load %arg3[%c0_3, %c0_4] : memref<1x48xf32, #tpu.memory_space<vmem>>, vector<1x48xf32>
    %cst = arith.constant dense<0.000000e+00> : vector<32x48xf32>
    %3 = tpu.matmul %0, %1, %cst {dimension_numbers = #tpu.dot_dimension_numbers<[1], [0], [0], [1], [0, 0, 1, 1], [], []>} : vector<32x288xbf16>, vector<288x48xbf16>, vector<32x48xf32> -> vector<32x48xf32>
    %4 = vector.broadcast %2 : vector<1x48xf32> to vector<32x48xf32>
    %5 = arith.addf %3, %4 : vector<32x48xf32>
    %cst_5 = arith.constant 0.000000e+00 : f32
    %cst_6 = arith.constant 6.000000e+00 : f32
    %6 = vector.broadcast %cst_5 : f32 to vector<32x48xf32>
    %7 = arith.maximumf %6, %5 : vector<32x48xf32>
    %8 = vector.broadcast %cst_6 : f32 to vector<32x48xf32>
    %9 = arith.minimumf %8, %7 : vector<32x48xf32>
    %c0_7 = arith.constant 0 : index
    %c0_8 = arith.constant 0 : index
    %10 = vector.load %arg4[%c0_7, %c0_8] : memref<48x48xbf16, #tpu.memory_space<vmem>>, vector<48x48xbf16>
    %c0_9 = arith.constant 0 : index
    %c0_10 = arith.constant 0 : index
    %11 = vector.load %arg5[%c0_9, %c0_10] : memref<1x48xf32, #tpu.memory_space<vmem>>, vector<1x48xf32>
    %12 = arith.truncf %9 : vector<32x48xf32> to vector<32x48xbf16>
    %cst_11 = arith.constant dense<0.000000e+00> : vector<32x48xf32>
    %13 = tpu.matmul %12, %10, %cst_11 {dimension_numbers = #tpu.dot_dimension_numbers<[1], [0], [0], [1], [0, 0, 1, 1], [], []>} : vector<32x48xbf16>, vector<48x48xbf16>, vector<32x48xf32> -> vector<32x48xf32>
    %14 = vector.broadcast %11 : vector<1x48xf32> to vector<32x48xf32>
    %15 = arith.addf %13, %14 : vector<32x48xf32>
    %c0_12 = arith.constant 0 : index
    %c0_13 = arith.constant 0 : index
    %16 = vector.load %arg6[%c0_12, %c0_13] : memref<32x48xf32, #tpu.memory_space<vmem>>, vector<32x48xf32>
    tpu.vector_store %arg6[%c0_12, %c0_13], %15 {strides = array<i32>} : memref<32x48xf32, #tpu.memory_space<vmem>>, vector<32x48xf32>,
    return
  }
  func.func @transform_0(%arg0: i32) -> (i32, i32) {
    %c0_i32 = arith.constant 0 : i32
    %c0_i32_0 = arith.constant 0 : i32
    return %arg0, %c0_i32 : i32, i32
  }
  func.func @transform_1(%arg0: i32) -> (i32, i32) {
    %c0_i32 = arith.constant 0 : i32
    %c0_i32_0 = arith.constant 0 : i32
    %c0_i32_1 = arith.constant 0 : i32
    return %c0_i32, %c0_i32_0 : i32, i32
  }
  func.func @transform_2(%arg0: i32) -> (i32, i32) {
    %c0_i32 = arith.constant 0 : i32
    %c0_i32_0 = arith.constant 0 : i32
    %c0_i32_1 = arith.constant 0 : i32
    return %c0_i32, %c0_i32_0 : i32, i32
  }
  func.func @transform_3(%arg0: i32) -> (i32, i32) {
    %c0_i32 = arith.constant 0 : i32
    %c0_i32_0 = arith.constant 0 : i32
    %c0_i32_1 = arith.constant 0 : i32
    return %c0_i32, %c0_i32_0 : i32, i32
  }
  func.func @transform_4(%arg0: i32) -> (i32, i32) {
    %c0_i32 = arith.constant 0 : i32
    %c0_i32_0 = arith.constant 0 : i32
    %c0_i32_1 = arith.constant 0 : i32
    return %c0_i32, %c0_i32_0 : i32, i32
  }
  func.func @transform_5(%arg0: i32) -> (i32, i32) {
    %c0_i32 = arith.constant 0 : i32
    %c0_i32_0 = arith.constant 0 : i32
    return %arg0, %c0_i32 : i32, i32
  }
}

</mosaic_0001>

<bundles_post_ra>
// kernel: patch_embedding.2
= control target key start
LH: loop header
LB: loop body
LE: loop exit
PB: predicated region body
PF: predicated region fallthrough
CT: control target
= control target key end

     0   :  { %vm118_vm0 = vcmask 1044480   ;;  %vm119_vm1 = vcmask 1045504   ;;  %vm93_vm2 = vcmask 220160   ;;  %v435_v1 = vmov 65535   ;;  %s579_s1 = inlined_call_operand.vmem [shape: bf16[27,32], index: 1, kind: input, shape index: {}]   ;;  %s580_s0 = inlined_call_operand.vmem [shape: bf16[128,27], index: 0, kind: input, shape index: {}]   ;;  %s581_s2 = inlined_call_operand.vmem [shape: f32[1,32], index: 2, kind: input, shape index: {}]   ;;  %s582_s3 = inlined_call_operand.vmem [shape: bf16[128,32], index: 3, kind: output, shape index: {}]  }
   0x1   :  { %v425_v0 = vld [vmem:[%s579_s1] sm:$0xff]   ;;  %v120_v2 = vsel %vm118_vm0, 4294967295, %v435_v1  ;;  %v426_v3 = vld [vmem:[%s579_s1 + $0x8] sm:$0x3f]   ;;  %v431_v10 = vld [vmem:[%s580_s0 + $0x10] sm:$0xff]   ;;  %vm318_vm3 = vcmask 257024  }
   0x2   :  { %400 = vmatprep.subr.bf16.mxu0 %v425_v0  ;;  %420 = vmatprep.subr.bf16.mxu1 %v425_v0  ;;  %v121_v4 = vsel %vm119_vm1, %v120_v2, 0  ;;  %v427_v5 = vld [vmem:[%s580_s0] sm:$0xff]   ;;  %v429_v8 = vld [vmem:[%s580_s0 + $0x8] sm:$0xff]   ;;  %v432_v11 = vld [vmem:[%s580_s0 + $0x30] sm:$0xff]  }
   0x3   :  { %401 = vmatpush3.bf16.msra.mxu0 %v425_v0  ;;  %422 = vmatpush3.bf16.msra.mxu1 %v425_v0  ;;  %v123_v6 = vand.u32 %v426_v3, %v121_v4  ;;  %v428_v7 = vld [vmem:[%s580_s0 + $0x20] sm:$0xff]   ;;  %v430_v9 = vld [vmem:[%s580_s0 + $0x28] sm:$0xff]   ;;  %v433_v12 = vld [vmem:[%s580_s0 + $0x18] sm:$0xff]  }
   0x4   :  { %404 = vmatprep.mubr.msk.bf16.mxu0 %vm93_vm2, %v427_v5  ;;  %412 = vmatprep.mubr.msk.bf16.mxu1 %vm93_vm2, %v428_v7  ;;  %v434_v13 = vld [vmem:[%s580_s0 + $0x38] sm:$0xff]   ;;  %v497_v14 = vld [vmem:[%s581_s2] ss:$0 sm:$0xff] }
   0x5   :  { %402 = vmatprep.subr.bf16.mxu0 %v123_v6  ;;  %421 = vmatprep.subr.bf16.mxu1 %v123_v6 }
   0x7   :  { %403 = vmatpush3.bf16.msra.mxu0 %v123_v6  ;;  %423 = vmatpush3.bf16.msra.mxu1 %v123_v6 }
   0xa   :  { %405 = vmatmul.mubr.msk.bf16.vlgmr.msra.gmra.mrb[0].mxu0 %vm93_vm2, %v429_v8  ;;  %413 = vmatmul.mubr.msk.bf16.vlgmr.msra.gmra.mrb[0].mxu1 %vm93_vm2, %v430_v9 }
   0xb   :  { %408 = vmatprep.mubr.msk.bf16.mxu0 %vm93_vm2, %v431_v10  ;;  %416 = vmatprep.mubr.msk.bf16.mxu1 %vm93_vm2, %v432_v11 }
  0x12   :  { %409 = vmatmul.mubr.msk.bf16.gmra.mrb[4].mxu0 %vm93_vm2, %v433_v12  ;;  %417 = vmatmul.mubr.msk.bf16.gmra.mrb[4].mxu1 %vm93_vm2, %v434_v13 }
  0xdd   :  { %v406_v15 = vpop.f32.mrb[0].mxu0  ;;  %v414_v16 = vpop.f32.mrb[0].mxu1 }
  0xde   :  { %v168_v17 = vadd.f32 %v406_v15, %v497_v14  ;;  %v200_v18 = vadd.f32 %v414_v16, %v497_v14  ;;  %v159_v19 = vpop.f32.mrb[1].mxu0  ;;  %v191_v20 = vpop.f32.mrb[1].mxu1 }
  0xdf   :  { %v160_v21 = vadd.f32 %v497_v14, %v159_v19  ;;  %v192_v22 = vadd.f32 %v497_v14, %v191_v20  ;;  %v407_v23 = vpop.f32.mrb[2].mxu0  ;;  %v415_v24 = vpop.f32.mrb[2].mxu1 }
  0xe0   :  { %v224_v25 = vmax.f32 %v168_v17, 0.0  ;;  %v232_v26 = vmax.f32 %v200_v18, 0.0  ;;  %v171_v27 = vadd.f32 %v407_v23, %v497_v14  ;;  %v203_v28 = vadd.f32 %v415_v24, %v497_v14  ;;  %v162_v29 = vpop.f32.mrb[3].mxu0  ;;  %v194_v30 = vpop.f32.mrb[3].mxu1 }
  0xe1   :  { %v222_v31 = vmax.f32 %v160_v21, 0.0  ;;  %v230_v32 = vmax.f32 %v192_v22, 0.0  ;;  %v163_v33 = vadd.f32 %v497_v14, %v162_v29  ;;  %v195_v34 = vadd.f32 %v497_v14, %v194_v30 }
  0xe2   :  { %v240_v35 = vmin.f32 %v224_v25, 6.0  ;;  %v248_v36 = vmin.f32 %v232_v26, 6.0  ;;  %v225_v37 = vmax.f32 %v171_v27, 0.0  ;;  %v233_v38 = vmax.f32 %v203_v28, 0.0 }
  0xe3   :  { %v238_v39 = vmin.f32 %v222_v31, 6.0  ;;  %v246_v40 = vmin.f32 %v230_v32, 6.0  ;;  %v223_v41 = vmax.f32 %v163_v33, 0.0  ;;  %v231_v42 = vmax.f32 %v195_v34, 0.0 }
  0xe4   :  { %v376_v43 = vpack.c.bf16 %v240_v35, %v240_v35  ;;  %v384_v44 = vpack.c.bf16 %v248_v36, %v248_v36  ;;  %v241_v45 = vmin.f32 %v225_v37, 6.0  ;;  %v249_v46 = vmin.f32 %v233_v38, 6.0 }
  0xe5   :  { %v374_v47 = vpack.c.bf16 %v238_v39, %v238_v39  ;;  %v382_v48 = vpack.c.bf16 %v246_v40, %v246_v40  ;;  %v239_v49 = vmin.f32 %v223_v41, 6.0  ;;  %v247_v50 = vmin.f32 %v231_v42, 6.0  ;;  %v410_v51 = vpop.f32.mrb[4].mxu0  ;;  %v418_v52 = vpop.f32.mrb[4].mxu1 }
  0xe6   :  { %321 = vst.msk [vmem:[%s582_s3 + $0x8] sm:$0xf] %vm318_vm3, %v376_v43  ;;  %329 = vst.msk [vmem:[%s582_s3 + $0x28] sm:$0xf] %vm318_vm3, %v384_v44  ;;  %v377_v53 = vpack.c.bf16 %v241_v45, %v241_v45  ;;  %v385_v54 = vpack.c.bf16 %v249_v46, %v249_v46  ;;  %v184_v55 = vadd.f32 %v410_v51, %v497_v14  ;;  %v175_v57 = vpop.f32.mrb[5].mxu0  ;;  %v207_v58 = vpop.f32.mrb[5].mxu1 }
  0xe7   :  { %v216_v56 = vadd.f32 %v418_v52, %v497_v14  ;;  %319 = vst.msk [vmem:[%s582_s3] sm:$0xf] %vm318_vm3, %v374_v47  ;;  %327 = vst.msk [vmem:[%s582_s3 + $0x20] sm:$0xf] %vm318_vm3, %v382_v48  ;;  %v375_v59 = vpack.c.bf16 %v239_v49, %v239_v49  ;;  %v383_v60 = vpack.c.bf16 %v247_v50, %v247_v50  ;;  %v411_v63 = vpop.f32.mrb[6].mxu0  ;;  %v419_v0 = vpop.f32.mrb[6].mxu1 }
  0xe8   :  { %v176_v61 = vadd.f32 %v497_v14, %v175_v57  ;;  %v208_v62 = vadd.f32 %v497_v14, %v207_v58  ;;  %322 = vst.msk [vmem:[%s582_s3 + $0xc] sm:$0xf] %vm318_vm3, %v377_v53  ;;  %330 = vst.msk [vmem:[%s582_s3 + $0x2c] sm:$0xf] %vm318_vm3, %v385_v54  ;;  %v228_v1 = vmax.f32 %v184_v55, 0.0  ;;  %v187_v3 = vadd.f32 %v411_v63, %v497_v14  ;;  %v178_v5 = vpop.f32.mrb[7].mxu0 }
  0xe9   :  { %v236_v2 = vmax.f32 %v216_v56, 0.0  ;;  %v219_v4 = vadd.f32 %v419_v0, %v497_v14  ;;  %v210_v6 = vpop.f32.mrb[7].mxu1  ;;  %320 = vst.msk [vmem:[%s582_s3 + $0x4] sm:$0xf] %vm318_vm3, %v375_v59  ;;  %328 = vst.msk [vmem:[%s582_s3 + $0x24] sm:$0xf] %vm318_vm3, %v383_v60  ;;  %v179_v9 = vadd.f32 %v497_v14, %v178_v5 }
  0xea   :  { %v226_v7 = vmax.f32 %v176_v61, 0.0  ;;  %v234_v8 = vmax.f32 %v208_v62, 0.0  ;;  %v211_v10 = vadd.f32 %v497_v14, %v210_v6  ;;  %v244_v11 = vmin.f32 %v228_v1, 6.0 }
  0xeb   :  { %v252_v12 = vmin.f32 %v236_v2, 6.0  ;;  %v229_v13 = vmax.f32 %v187_v3, 0.0  ;;  %v237_v15 = vmax.f32 %v219_v4, 0.0  ;;  %v227_v18 = vmax.f32 %v179_v9, 0.0 }
  0xec   :  { %v242_v16 = vmin.f32 %v226_v7, 6.0  ;;  %v250_v17 = vmin.f32 %v234_v8, 6.0  ;;  %v235_v19 = vmax.f32 %v211_v10, 0.0  ;;  %v380_v20 = vpack.c.bf16 %v244_v11, %v244_v11 }
  0xed   :  { %v388_v21 = vpack.c.bf16 %v252_v12, %v252_v12  ;;  %v245_v22 = vmin.f32 %v229_v13, 6.0  ;;  %v253_v23 = vmin.f32 %v237_v15, 6.0  ;;  %v243_v26 = vmin.f32 %v227_v18, 6.0 }
  0xee   :  { %v378_v24 = vpack.c.bf16 %v242_v16, %v242_v16  ;;  %v386_v25 = vpack.c.bf16 %v250_v17, %v250_v17  ;;  %v251_v27 = vmin.f32 %v235_v19, 6.0  ;;  %325 = vst.msk [vmem:[%s582_s3 + $0x18] sm:$0xf] %vm318_vm3, %v380_v20 }
  0xef   :  { %333 = vst.msk [vmem:[%s582_s3 + $0x38] sm:$0xf] %vm318_vm3, %v388_v21  ;;  %v381_v14 = vpack.c.bf16 %v245_v22, %v245_v22  ;;  %v389_v28 = vpack.c.bf16 %v253_v23, %v253_v23  ;;  %v379_v29 = vpack.c.bf16 %v243_v26, %v243_v26 }
  0xf0   :  { %323 = vst.msk [vmem:[%s582_s3 + $0x10] sm:$0xf] %vm318_vm3, %v378_v24  ;;  %331 = vst.msk [vmem:[%s582_s3 + $0x30] sm:$0xf] %vm318_vm3, %v386_v25  ;;  %v387_v30 = vpack.c.bf16 %v251_v27, %v251_v27 }
  0xf1   :  { %326 = vst.msk [vmem:[%s582_s3 + $0x1c] sm:$0xf] %vm318_vm3, %v381_v14  ;;  %334 = vst.msk [vmem:[%s582_s3 + $0x3c] sm:$0xf] %vm318_vm3, %v389_v28 }
  0xf2   :  { %324 = vst.msk [vmem:[%s582_s3 + $0x14] sm:$0xf] %vm318_vm3, %v379_v29  ;;  %332 = vst.msk [vmem:[%s582_s3 + $0x34] sm:$0xf] %vm318_vm3, %v387_v30 }

// kernel: patch_embedding.3
= control target key start
LH: loop header
LB: loop body
LE: loop exit
PB: predicated region body
PF: predicated region fallthrough
CT: control target
= control target key end

     0   :  { %vm211_vm0 = vcmask 261120   ;;  %s715_s0 = inlined_call_operand.vmem [shape: bf16[32,288], index: 0, kind: input, shape index: {}]   ;;  %s716_s1 = inlined_call_operand.vmem [shape: bf16[288,48], index: 1, kind: input, shape index: {}]   ;;  %s717_s2 = inlined_call_operand.vmem [shape: f32[1,48], index: 2, kind: input, shape index: {}]   ;;  %s718_s3 = inlined_call_operand.vmem [shape: bf16[48,48], index: 3, kind: input, shape index: {}]   ;;  %s719_s4 = inlined_call_operand.vmem [shape: f32[1,48], index: 4, kind: input, shape index: {}]   ;;  %s720_s5 = inlined_call_operand.hbm [shape: f32[32,48], index: 5, kind: output, shape index: {}]  }
   0x1   :  { %v524_v0 = vld [vmem:[%s716_s1 + $0x40] sm:$0xff]   ;;  %v526_v2 = vld [vmem:[%s716_s1 + $0x48] sm:$0xff]   ;;  %v528_v4 = vld [vmem:[%s716_s1 + $0x50] sm:$0xff]  }
   0x2   :  { %v525_v1 = vld [vmem:[%s716_s1] sm:$0xff]   ;;  %466 = vmatprep.subr.bf16.mxu0 %v524_v0  ;;  %v527_v3 = vld [vmem:[%s716_s1 + $0x8] sm:$0xff]   ;;  %v529_v5 = vld [vmem:[%s716_s1 + $0x10] sm:$0xff]  }
   0x3   :  { %467 = vmatpush3.bf16.msra.mxu0 %v525_v1  ;;  %v530_v6 = vld [vmem:[%s716_s1 + $0x58] sm:$0xff]   ;;  %v532_v8 = vld [vmem:[%s716_s1 + $0x60] sm:$0xff]   ;;  %v534_v11 = vld [vmem:[%s716_s1 + $0x68] sm:$0xff]  }
   0x4   :  { %468 = vmatprep.subr.bf16.mxu0 %v526_v2  ;;  %v531_v7 = vld [vmem:[%s716_s1 + $0x18] sm:$0xff]   ;;  %v533_v9 = vld [vmem:[%s716_s1 + $0x20] sm:$0xff]   ;;  %v535_v12 = vld [vmem:[%s716_s1 + $0x28] sm:$0xff]  }
   0x5   :  { %v539_v10 = vld [vmem:[%s716_s1 + $0x80] sm:$0xff]   ;;  %v536_v13 = vld [vmem:[%s716_s1 + $0x70] sm:$0xff]   ;;  %v544_v15 = vld [vmem:[%s716_s1 + $0x88] sm:$0xff]  }
   0x6   :  { %503 = vmatprep.subr.bf16.mxu1 %v539_v10  ;;  %v543_v14 = vld [vmem:[%s715_s0 + $0x4] ss:$12 sps:$4 sm:$0xff]   ;;  %v545_v16 = vld [vmem:[%s715_s0 + $0x8] ss:$12 sps:$4 sm:$0xff]   ;;  %v546_v17 = vld [vmem:[%s715_s0 + $0x20] ss:$12 sps:$4 sm:$0xff]  }
   0x7   :  { %469 = vmatpush3.bf16.msra.mxu0 %v527_v3  ;;  %504 = vmatpush3.bf16.msra.mxu1 %v539_v10  ;;  %v537_v18 = vld [vmem:[%s716_s1 + $0x30] sm:$0xff]   ;;  %v538_v19 = vld [vmem:[%s716_s1 + $0x78] sm:$0xff]  }
   0x8   :  { %470 = vmatprep.subr.bf16.mxu0 %v528_v4  ;;  %250 = vmatprep.mubr.bf16.mxu0 %v543_v14 }
   0x9   :  { %505 = vmatprep.subr.bf16.mxu1 %v544_v15  ;;  %507 = vmatprep.mubr.msk.bf16.mxu1 %vm211_vm0, %v545_v16 }
   0xb   :  { %471 = vmatpush3.bf16.msra.mxu0 %v529_v5  ;;  %506 = vmatpush3.bf16.msra.mxu1 %v544_v15 }
   0xc   :  { %472 = vmatprep.subr.bf16.mxu0 %v530_v6 }
   0xf   :  { %473 = vmatpush3.bf16.msra.mxu0 %v531_v7 }
  0x10   :  { %474 = vmatprep.subr.bf16.mxu0 %v532_v8 }
  0x13   :  { %475 = vmatpush3.bf16.msra.mxu0 %v533_v9 }
  0x14   :  { %476 = vmatprep.subr.bf16.mxu0 %v534_v11 }
  0x17   :  { %477 = vmatpush3.bf16.msra.mxu0 %v535_v12 }
  0x18   :  { %478 = vmatprep.subr.bf16.mxu0 %v536_v13 }
  0x19   :  { %10 = vsyncpa [#allocation3], 0  ;;  %508 = vmatmul.mubr.msk.bf16.vlgmr.msra.gmra.mrb[0].mxu1 %vm211_vm0, %v546_v17  ;;  %v540_v20 = vld [vmem:[%s716_s1 + $0x38] sm:$0xff]   ;;  %v541_v21 = vld [vmem:[%s715_s0] ss:$12 sps:$4 sm:$0xff]   ;;  %vm357_vm1 = vcmask 392192  }
  0x1a   :  { %v547_v22 = vld [vmem:[%s715_s0 + $0x1c] ss:$12 sps:$4 sm:$0xff]   ;;  %v549_v23 = vld [vmem:[%s715_s0 + $0x18] ss:$12 sps:$4 sm:$0xff]   ;;  %v552_v26 = vld [vmem:[%s718_s3 + $0x10] sm:$0xff]   ;;  %s577_s22 = smov [#allocation2]  }
  0x1b   :  { %479 = vmatpush3.bf16.msra.mxu0 %v537_v18  ;;  %v550_v24 = vld [vmem:[%s718_s3] sm:$0xff]   ;;  %v551_v25 = vld [vmem:[%s718_s3 + $0x8] sm:$0xff]   ;;  %s422_s23 = sshll.u32 %s577_s22, 4  ;;  %s423_s23 = int_to_ptr.vmem [resolvable:$true] %s422_s23 }
  0x1c   :  { %480 = vmatprep.subr.bf16.mxu0 %v538_v19  ;;  %511 = vmatprep.subr.bf16.mxu1 %v550_v24  ;;  %v433_v33 = vld [vmem:[%s717_s2] ss:$0 sm:$0xff]  ;;  %p558_p1 = scmp.lt.s32.totalorder %s423_s23, %s423_s23 }
  0x1d   :  { %512 = vmatpush3.bf16.msra.mxu1 %v550_v24  ;;  %v460_v62 = vld [vmem:[%s719_s4] ss:$0 sm:$0xff]  ;;  %s553_s4 = scalar_lea.vmem %s423_s23, 512 }
  0x1e   :  { %513 = vmatprep.subr.bf16.mxu1 %v551_v25  ;;  %p554_p0 = scmp.ne.s32.totalorder %s423_s23, %s553_s4  ;;  %p559_p2 = scmp.lt.s32.totalorder %s553_s4, %s553_s4 }
  0x1f   :  { %481 = vmatpush3.bf16.msra.mxu0 %v540_v20 }
  0x20   :  { %p560_p3 = por %p559_p2, %p558_p1 }
  0x21   :  { %514 = vmatpush3.bf16.msra.mxu1 %v551_v25 }
  0x22   :  { %251 = vmatmul.mubr.bf16.vlgmr.msra.gmra.mrb[0].mxu0 %v541_v21  ;;  %515 = vmatprep.subr.bf16.mxu1 %v552_v26  ;;  %p561_p4 = pnand %p560_p3, %p554_p0 }
  0x23   :  { %258 = vmatprep.mubr.bf16.mxu0 %v547_v22 }
  0x25   :  { %516 = vmatpush3.bf16.msra.mxu1 %v552_v26 }
  0x2a   :  { %259 = vmatmul.mubr.bf16.gmra.mrb[4].mxu0 %v549_v23 }
  0xec   :  { %v509_v27 = vpop.f32.mrb[0].mxu1 }
  0xed   :  { %v301_v28 = vpop.f32.mrb[1].mxu1 }
  0xee   :  { %v510_v29 = vpop.f32.mrb[2].mxu1 }
  0xef   :  { %v304_v30 = vpop.f32.mrb[3].mxu1 }
  0xf5   :  { %v482_v31 = vpop.f32.mrb[0].mxu0 }
  0xf6   :  { %v483_v32 = vpop.f32.mrb[1].mxu0 }
  0xf7   :  { %v484_v34 = vadd.f32 %v483_v32, %v482_v31  ;;  %v485_v35 = vpop.f32.mrb[2].mxu0 }
  0xf8   :  { %v486_v36 = vpop.f32.mrb[3].mxu0 }
  0xf9   :  { %v487_v37 = vadd.f32 %v486_v36, %v485_v35  ;;  %v253_v38 = vadd.f32 %v484_v34, %v433_v33 }
  0xfb   :  { %v302_v39 = vadd.f32 %v301_v28, %v253_v38  ;;  %v256_v40 = vadd.f32 %v487_v37, %v433_v33 }
  0xfd   :  { %v316_v41 = vmax.f32 %v302_v39, 0.0  ;;  %v305_v42 = vadd.f32 %v304_v30, %v256_v40  ;;  %v488_v43 = vpop.f32.mrb[4].mxu0 }
  0xfe   :  { %v489_v44 = vpop.f32.mrb[5].mxu0 }
  0xff   :  { %v317_v45 = vmax.f32 %v305_v42, 0.0  ;;  %v490_v46 = vadd.f32 %v489_v44, %v488_v43  ;;  %v491_v47 = vpop.f32.mrb[6].mxu0  ;;  %v320_v49 = vmin.f32 %v316_v41, 6.0 }
 0x100   :  { %v492_v48 = vpop.f32.mrb[7].mxu0 }
 0x101   :  { %v321_v50 = vmin.f32 %v317_v45, 6.0  ;;  %v261_v51 = vadd.f32 %v490_v46, %v433_v33  ;;  %v493_v52 = vadd.f32 %v492_v48, %v491_v47 }
 0x103   :  { %v331_v53 = vpack.c.bf16 %v321_v50, %v320_v49  ;;  %v310_v54 = vadd.f32 %v509_v27, %v261_v51  ;;  %v264_v55 = vadd.f32 %v493_v52, %v433_v33 }
 0x105   :  { %v318_v56 = vmax.f32 %v310_v54, 0.0  ;;  %v313_v57 = vadd.f32 %v510_v29, %v264_v55  ;;  %517 = vmatprep.mubr.msk.bf16.mxu1 %vm357_vm1, %v331_v53 }
 0x107   :  { %v319_v58 = vmax.f32 %v313_v57, 0.0  ;;  %v322_v59 = vmin.f32 %v318_v56, 6.0 }
 0x109   :  { %v323_v60 = vmin.f32 %v319_v58, 6.0 }
 0x10b   :  { %v332_v61 = vpack.c.bf16 %v323_v60, %v322_v59 }
 0x10d   :  { %518 = vmatmul.mubr.msk.bf16.vlgmr.msra.gmra.mrb[4].mxu1 %vm357_vm1, %v332_v61 }
 0x1e0   :  { %v519_v63 = vpop.f32.mrb[4].mxu1 }
 0x1e1   :  { %v407_v0 = vadd.f32 %v519_v63, %v460_v62  ;;  %v398_v1 = vpop.f32.mrb[5].mxu1 }
 0x1e2   :  { %v399_v2 = vadd.f32 %v460_v62, %v398_v1  ;;  %v520_v3 = vpop.f32.mrb[6].mxu1 }
 0x1e3   :  { %415 = vst.msk [vmem:[#allocation2 + $0x10] sm:$0xff] %vm357_vm1, %v407_v0  ;;  %v410_v4 = vadd.f32 %v520_v3, %v460_v62  ;;  %v401_v5 = vpop.f32.mrb[7].mxu1 }
 0x1e4   :  { %413 = vst.msk [vmem:[#allocation2] sm:$0xff] %vm357_vm1, %v399_v2  ;;  %v402_v6 = vadd.f32 %v460_v62, %v401_v5 }
 0x1e5   :  { %416 = vst.msk [vmem:[#allocation2 + $0x18] sm:$0xff] %vm357_vm1, %v410_v4 }
 0x1e6   :  { %414 = vst.msk [vmem:[#allocation2 + $0x8] sm:$0xff] %vm357_vm1, %v402_v6 }
 0x1e7   :  { %564 = shalt.err (!%p561_p4)
}
 0x1e8   :  { %s565_s26 = scalar_lea.hbm %s720_s5, 512 }
 0x1e9   :  { %p566_p5 = scmp.ne.s32.totalorder %s720_s5, %s565_s26  ;;  %p569_p6 = scmp.lt.u32.totalorder %s565_s26, %s720_s5 }
 0x1eb   :  { %p571_p7 = pnand %p569_p6, %p566_p5 }
 0x1ed   :  { %574 = shalt.err (!%p571_p7)
}
 0x1ee   :  { %s578_s6 = smov 128   ;;  %s579_s7 = smov 8  }
 0x1ef   :  { %428 = dma.vmem_to_hbm [thread:$0]  %s423_s23, 512, %s720_s5, [#allocation3], %s578_s6, %s578_s6, %s579_s7  }
 0x1f0   :  { %575 = dma.done.wait [#allocation3], 512  }
 0x1f1   :  { %576 = vsyncadd [#allocation3], 4294966784 }
 0x1f2   :  { %432 = vsyncpa [#allocation3], 1 }

</bundles_post_ra>
